<compile_context>
chip_gen: v7x
topology: tpu7x:2x2x1
jax: 0.10.0
libtpu: 0.0.40
codegen_flags: <defaults>
</compile_context>

<pallas_src>
import functools
import math

import jax
import jax.numpy as jnp
from jax import lax
from jax.experimental import pallas as pl
from jax.experimental.pallas import tpu as pltpu


def make_positional_encoding_table(max_len: int, d_model: int) -> jnp.ndarray:
    """PE buffer, identical math/layout to the PyTorch __init__: (max_len, 1, d_model)."""
    position = jnp.arange(max_len, dtype=jnp.float32)[:, None]              # (max_len, 1)
    div_term = jnp.exp(
        jnp.arange(0, d_model, 2, dtype=jnp.float32) * (-math.log(10000.0) / d_model)
    )                                                                       # (d_model/2,)
    pe = jnp.zeros((max_len, d_model), dtype=jnp.float32)
    pe = pe.at[:, 0::2].set(jnp.sin(position * div_term))
    pe = pe.at[:, 1::2].set(jnp.cos(position * div_term))
    return pe[:, None, :]                                                    # (max_len, 1, d_model)


# --------------------------------------------------------------------------- #
# Kernels
# --------------------------------------------------------------------------- #
def _pe_eval_kernel(x_ref, pe_ref, o_ref):
    # x_ref : (tile_s, B, D)   D on lanes, B on sublanes
    # pe_ref: (tile_s, 1, D)   pre-cast to x dtype wrapper-side
    # Sublane broadcast over B happens inside the add (free on the VPU).
    o_ref[...] = x_ref[...] + pe_ref[...]


def _mix32(h: jnp.ndarray) -> jnp.ndarray:
    """murmur3 finalizer: constant-shift, VPU-only 32-bit avalanche."""
    h = h ^ (h >> 16)
    h = h * jnp.uint32(0x85EBCA6B)
    h = h ^ (h >> 13)
    h = h * jnp.uint32(0xC2B2AE35)
    h = h ^ (h >> 16)
    return h


def _pe_dropout_kernel(seed_ref, x_ref, pe_ref, o_ref, *, p: float, tile_s: int):
    # seed_ref: (1,) int32 in SMEM (scalar prefetch)
    y = x_ref[...] + pe_ref[...]                                    # (tile_s, B, D)

    s, b, d = x_ref.shape
    # Global linear element index -> counter-based PRNG.  The mask depends only on
    # (seed, element position), never on tile_s or grid shape.
    row = lax.broadcasted_iota(jnp.int32, (s, b, d), 0) + pl.program_id(0) * tile_s
    col = (lax.broadcasted_iota(jnp.int32, (s, b, d), 1) * d
           + lax.broadcasted_iota(jnp.int32, (s, b, d), 2))
    lin = (row * (b * d) + col).astype(jnp.uint32)

    key = seed_ref[0].astype(jnp.uint32) * jnp.uint32(0x9E3779B1) + jnp.uint32(0x85EBCA6B)
    bits = _mix32(_mix32(lin ^ key) + jnp.uint32(0xC2B2AE35))

    # keep with probability (1 - p): one unsigned compare + one select, scale folded in.
    thresh = jnp.uint32(min(int(round(p * (2 ** 32))), 2 ** 32 - 1))
    scale = jnp.asarray(1.0 / (1.0 - p), dtype=y.dtype)
    o_ref[...] = jnp.where(bits >= thresh, y * scale, jnp.zeros((), y.dtype))


# --------------------------------------------------------------------------- #
# Wrapper
# --------------------------------------------------------------------------- #
def _vmem_budget_and_limit() -> tuple[int, int]:
    """Generation-aware VMEM budget (tile sizing) and scoped limit (compiler param)."""
    try:
        cap = int(pltpu.get_tpu_info().vmem_capacity_bytes)
    except Exception:
        cap = 64 * 1024 * 1024          # v7x-conservative fallback
    return int(cap * 0.60), int(cap * 0.75)


def _pick_tile_s(seq_len: int, row_bytes: int, vmem_budget_bytes: int) -> int:
    """Largest seq tile (multiple of 8, <=1024) whose pipelined footprint fits."""
    if seq_len <= 8:
        return seq_len                   # full-extent leading dim is always legal
    max_rows = max(8, vmem_budget_bytes // max(row_bytes, 1))
    tile = min(seq_len, 1024, max_rows)
    tile = max(8, (tile // 8) * 8)
    # When S is large, guarantee >=2 grid steps so v7x's 2 TensorCores both stream,
    # while keeping >=256-row tiles (still ~85% of HBM roofline on v5e/v6e).
    if seq_len >= 512 and tile >= seq_len:
        half = max(256, (((seq_len + 1) // 2) // 8) * 8)
        tile = min(tile, half)
    return tile


def positional_encoding_forward(
    x: jnp.ndarray,
    pe_table: jnp.ndarray,
    *,
    p: float = 0.1,
    training: bool = False,
    seed: int = 0,
    tile_s: int | None = None,
) -> jnp.ndarray:
    """Pallas implementation of PositionalEncoding.forward.

    x        : (S, B, D)
    pe_table : (max_len, 1, D) or (max_len, D), max_len >= S
    """
    S, B, D = x.shape
    assert pe_table.shape[0] >= S and pe_table.shape[-1] == D
    BD = B * D

    if training and p >= 1.0:            # degenerate dropout: everything dropped
        return jnp.zeros_like(x)
    apply_dropout = training and p > 0.0

    # Pre-cast pe to x.dtype wrapper-side (halves pe DMA bytes / VMEM for bf16 x).
    pe_c = pe_table.reshape(pe_table.shape[0], 1, D).astype(x.dtype)

    xbytes = jnp.dtype(x.dtype).itemsize
    vmem_budget, vmem_limit = _vmem_budget_and_limit()

    if tile_s is None:
        # Per-seq-row bytes: double-buffered x-in + out + pe blocks, plus the
        # in-kernel temporaries (y, iota/random uint32 arrays) for the dropout path.
        row_bytes = 4 * BD * xbytes + 2 * D * xbytes
        row_bytes += (BD * xbytes + 3 * BD * 4) if apply_dropout else BD * xbytes
        tile_s = _pick_tile_s(S, row_bytes, vmem_budget)
    grid = (pl.cdiv(S, tile_s),)

    x_spec = pl.BlockSpec((tile_s, B, D), lambda i, *_: (i, 0, 0))
    pe_spec = pl.BlockSpec((tile_s, 1, D), lambda i, *_: (i, 0, 0))
    out_spec = pl.BlockSpec((tile_s, B, D), lambda i, *_: (i, 0, 0))
    out_shape = jax.ShapeDtypeStruct((S, B, D), x.dtype)

    cost = pl.CostEstimate(
        flops=S * BD * (4 if apply_dropout else 1),
        transcendentals=0,
        bytes_accessed=2 * S * BD * xbytes + S * D * xbytes,
    )
    cparams = pltpu.CompilerParams(
        dimension_semantics=("parallel",),    # independent output block per tile
        vmem_limit_bytes=vmem_limit,
    )

    if apply_dropout:
        kernel = functools.partial(_pe_dropout_kernel, p=float(p), tile_s=int(tile_s))
        seed_arr = jnp.asarray([seed], dtype=jnp.int32)
        out = pl.pallas_call(
            kernel,
            out_shape=out_shape,
            grid_spec=pltpu.PrefetchScalarGridSpec(
                num_scalar_prefetch=1,        # seed lands in SMEM
                grid=grid,
                in_specs=[x_spec, pe_spec],
                out_specs=out_spec,
            ),
            compiler_params=cparams,
            cost_estimate=cost,
        )(seed_arr, x, pe_c)
    else:
        out = pl.pallas_call(
            _pe_eval_kernel,
            out_shape=out_shape,
            grid=grid,
            in_specs=[x_spec, pe_spec],
            out_specs=out_spec,
            compiler_params=cparams,
            cost_estimate=cost,
        )(x, pe_c)

    return out


if __name__ == "__main__":
    # Small shapes consistent with the module: seq=16, batch=2, d_model=32.
    S, B, D = 16, 2, 32
    MAX_LEN = 64

    key = jax.random.PRNGKey(0)
    x = jax.random.normal(key, (S, B, D), dtype=jnp.float32)
    pe_table = make_positional_encoding_table(MAX_LEN, D)

    # Pure-JAX reference for the deterministic part of the forward pass.
    y_ref = x + pe_table[:S]              # (S,1,D) broadcast over batch

    # --- Eval mode: dropout is identity, deterministic and checkable. ---
    y = positional_encoding_forward(x, pe_table, p=0.1, training=False)
    y = jax.block_until_ready(y)
    assert y.shape == (S, B, D)
    assert jnp.allclose(y, y_ref, atol=1e-6, rtol=1e-6), "eval-mode mismatch vs reference"

    # --- Training mode: inverted dropout; every element must be 0 or scaled. ---
    p_tr = 0.3
    y_tr = positional_encoding_forward(x, pe_table, p=p_tr, training=True, seed=123)
    y_tr = jax.block_until_ready(y_tr)
    scale = 1.0 / (1.0 - p_tr)
    valid = jnp.isclose(y_tr, 0.0, atol=1e-6) | jnp.isclose(
        y_tr, y_ref * scale, atol=1e-4, rtol=1e-4
    )
    assert bool(jnp.all(valid)), "training-mode dropout output not {0, y/(1-p)}"
    frac_kept = float(jnp.mean((jnp.abs(y_tr) > 1e-6).astype(jnp.float32)))
    assert 0.35 < frac_kept < 0.95, "dropout keep-fraction looks degenerate"

    # TODO(synk): training-mode dropout uses a counter-based in-kernel PRNG, so the
    # mask will not match torch's RNG stream bit-for-bit (statistically equivalent).

    print("KERNEL_OK")
</pallas_src>

<mosaic_0001>
module attributes {stable_mosaic.version = 11 : i64} {
  func.func @_pe_eval_kernel(%arg0: i32, %arg1: memref<16x2x32xf32, #tpu.memory_space<vmem>>, %arg2: memref<16x1x32xf32, #tpu.memory_space<vmem>>, %arg3: memref<16x2x32xf32, #tpu.memory_space<vmem>>) attributes {dimension_semantics = [#tpu.dimension_semantics<parallel>], iteration_bounds = array<i64: 1>, scalar_prefetch = 0 : i64, scratch_operands = 0 : i64, tpu.core_type = #tpu.core_type<tc>, window_params = [{transform_indices = @transform_0, window_bounds = array<i64: 16, 2, 32>}, {transform_indices = @transform_1, window_bounds = array<i64: 16, 1, 32>}, {transform_indices = @transform_2, window_bounds = array<i64: 16, 2, 32>}]} {
    %c0 = arith.constant 0 : index
    %c0_0 = arith.constant 0 : index
    %c0_1 = arith.constant 0 : index
    %0 = vector.load %arg1[%c0, %c0_0, %c0_1] : memref<16x2x32xf32, #tpu.memory_space<vmem>>, vector<16x2x32xf32>
    %c0_2 = arith.constant 0 : index
    %c0_3 = arith.constant 0 : index
    %c0_4 = arith.constant 0 : index
    %1 = vector.load %arg2[%c0_2, %c0_3, %c0_4] : memref<16x1x32xf32, #tpu.memory_space<vmem>>, vector<16x1x32xf32>
    %2 = vector.broadcast %1 : vector<16x1x32xf32> to vector<16x2x32xf32>
    %3 = arith.addf %0, %2 : vector<16x2x32xf32>
    %c0_5 = arith.constant 0 : index
    %c0_6 = arith.constant 0 : index
    %c0_7 = arith.constant 0 : index
    %4 = vector.load %arg3[%c0_5, %c0_6, %c0_7] : memref<16x2x32xf32, #tpu.memory_space<vmem>>, vector<16x2x32xf32>
    tpu.vector_store %arg3[%c0_5, %c0_6, %c0_7], %3 {strides = array<i32>} : memref<16x2x32xf32, #tpu.memory_space<vmem>>, vector<16x2x32xf32>,
    return
  }
  func.func @transform_0(%arg0: i32) -> (i32, i32, i32) {
    %c0_i32 = arith.constant 0 : i32
    %c0_i32_0 = arith.constant 0 : i32
    %c0_i32_1 = arith.constant 0 : i32
    return %arg0, %c0_i32, %c0_i32_0 : i32, i32, i32
  }
  func.func @transform_1(%arg0: i32) -> (i32, i32, i32) {
    %c0_i32 = arith.constant 0 : i32
    %c0_i32_0 = arith.constant 0 : i32
    %c0_i32_1 = arith.constant 0 : i32
    return %arg0, %c0_i32, %c0_i32_0 : i32, i32, i32
  }
  func.func @transform_2(%arg0: i32) -> (i32, i32, i32) {
    %c0_i32 = arith.constant 0 : i32
    %c0_i32_0 = arith.constant 0 : i32
    %c0_i32_1 = arith.constant 0 : i32
    return %arg0, %c0_i32, %c0_i32_0 : i32, i32, i32
  }
}

</mosaic_0001>

<bundles_post_ra>
// kernel: tpu_custom_call.1
= control target key start
LH: loop header
LB: loop body
LE: loop exit
PB: predicated region body
PF: predicated region fallthrough
CT: control target
= control target key end

     0   :  { %vm156_vm0 = vcmask 254976   ;;  %s374_s0 = inlined_call_operand.vmem [shape: f32[16,2,32], index: 0, kind: input, shape index: {}]   ;;  %s375_s1 = inlined_call_operand.vmem [shape: f32[64,1,32], index: 1, kind: input, shape index: {}]   ;;  %s376_s2 = inlined_call_operand.hbm [shape: f32[16,2,32], index: 2, kind: output, shape index: {}]  }
   0x1   :  { %v12_v0 = vld [vmem:[%s374_s0] sm:$0x3]  ;;  %v13_v3 = vld [vmem:[%s374_s0 + $0x2] sm:$0x3]  ;;  %v14_v5 = vld [vmem:[%s374_s0 + $0x4] sm:$0x3] }
   0x2   :  { %v189_v1 = vld [vmem:[%s375_s1] ss:$0 sm:$0xff]  ;;  %v190_v4 = vld [vmem:[%s375_s1 + $0x1] ss:$0 sm:$0xff]  ;;  %v191_v7 = vld [vmem:[%s375_s1 + $0x2] ss:$0 sm:$0xff] }
   0x3   :  { %v140_v2 = vadd.f32 %v189_v1, %v12_v0  ;;  %v141_v6 = vadd.f32 %v190_v4, %v13_v3  ;;  %v15_v8 = vld [vmem:[%s374_s0 + $0x6] sm:$0x3]  ;;  %v192_v9 = vld [vmem:[%s375_s1 + $0x3] ss:$0 sm:$0xff]  ;;  %v142_v10 = vadd.f32 %v191_v7, %v14_v5  ;;  %v16_v12 = vld [vmem:[%s374_s0 + $0x8] sm:$0x3] }
   0x4   :  { %v143_v11 = vadd.f32 %v192_v9, %v15_v8  ;;  %v193_v13 = vld [vmem:[%s375_s1 + $0x4] ss:$0 sm:$0xff]  ;;  %v17_v14 = vld [vmem:[%s374_s0 + $0xa] sm:$0x3]  ;;  %v194_v16 = vld [vmem:[%s375_s1 + $0x5] ss:$0 sm:$0xff] }
   0x5   :  { %157 = vst.msk [vmem:[#allocation2] sm:$0x3] %vm156_vm0, %v140_v2  ;;  %158 = vst.msk [vmem:[#allocation2 + $0x2] sm:$0x3] %vm156_vm0, %v141_v6  ;;  %v144_v15 = vadd.f32 %v193_v13, %v16_v12  ;;  %v18_v17 = vld [vmem:[%s374_s0 + $0xc] sm:$0x3]  ;;  %v145_v19 = vadd.f32 %v194_v16, %v17_v14 }
   0x6   :  { %v195_v18 = vld [vmem:[%s375_s1 + $0x6] ss:$0 sm:$0xff]  ;;  %159 = vst.msk [vmem:[#allocation2 + $0x4] sm:$0x3] %vm156_vm0, %v142_v10  ;;  %160 = vst.msk [vmem:[#allocation2 + $0x6] sm:$0x3] %vm156_vm0, %v143_v11 }
   0x7   :  { %v146_v20 = vadd.f32 %v195_v18, %v18_v17  ;;  %v19_v21 = vld [vmem:[%s374_s0 + $0xe] sm:$0x3]  ;;  %v196_v22 = vld [vmem:[%s375_s1 + $0x7] ss:$0 sm:$0xff]  ;;  %v20_v23 = vld [vmem:[%s374_s0 + $0x10] sm:$0x3] }
   0x8   :  { %161 = vst.msk [vmem:[#allocation2 + $0x8] sm:$0x3] %vm156_vm0, %v144_v15  ;;  %v147_v24 = vadd.f32 %v196_v22, %v19_v21  ;;  %v197_v25 = vld [vmem:[%s375_s1 + $0x8] ss:$0 sm:$0xff]  ;;  %v21_v26 = vld [vmem:[%s374_s0 + $0x12] sm:$0x3] }
   0x9   :  { %v198_v27 = vld [vmem:[%s375_s1 + $0x9] ss:$0 sm:$0xff]  ;;  %162 = vst.msk [vmem:[#allocation2 + $0xa] sm:$0x3] %vm156_vm0, %v145_v19  ;;  %163 = vst.msk [vmem:[#allocation2 + $0xc] sm:$0x3] %vm156_vm0, %v146_v20  ;;  %v148_v28 = vadd.f32 %v197_v25, %v20_v23 }
   0xa   :  { %v149_v29 = vadd.f32 %v198_v27, %v21_v26  ;;  %v22_v30 = vld [vmem:[%s374_s0 + $0x14] sm:$0x3]  ;;  %v199_v31 = vld [vmem:[%s375_s1 + $0xa] ss:$0 sm:$0xff]  ;;  %v23_v32 = vld [vmem:[%s374_s0 + $0x16] sm:$0x3] }
   0xb   :  { %164 = vst.msk [vmem:[#allocation2 + $0xe] sm:$0x3] %vm156_vm0, %v147_v24  ;;  %v150_v33 = vadd.f32 %v199_v31, %v22_v30  ;;  %v200_v34 = vld [vmem:[%s375_s1 + $0xb] ss:$0 sm:$0xff]  ;;  %v24_v35 = vld [vmem:[%s374_s0 + $0x18] sm:$0x3] }
   0xc   :  { %v201_v36 = vld [vmem:[%s375_s1 + $0xc] ss:$0 sm:$0xff]  ;;  %165 = vst.msk [vmem:[#allocation2 + $0x10] sm:$0x3] %vm156_vm0, %v148_v28  ;;  %166 = vst.msk [vmem:[#allocation2 + $0x12] sm:$0x3] %vm156_vm0, %v149_v29  ;;  %v151_v37 = vadd.f32 %v200_v34, %v23_v32 }
   0xd   :  { %v152_v38 = vadd.f32 %v201_v36, %v24_v35  ;;  %v25_v39 = vld [vmem:[%s374_s0 + $0x1a] sm:$0x3]  ;;  %v202_v40 = vld [vmem:[%s375_s1 + $0xd] ss:$0 sm:$0xff]  ;;  %v26_v41 = vld [vmem:[%s374_s0 + $0x1c] sm:$0x3] }
   0xe   :  { %167 = vst.msk [vmem:[#allocation2 + $0x14] sm:$0x3] %vm156_vm0, %v150_v33  ;;  %v153_v42 = vadd.f32 %v202_v40, %v25_v39  ;;  %v203_v43 = vld [vmem:[%s375_s1 + $0xe] ss:$0 sm:$0xff]  ;;  %v27_v44 = vld [vmem:[%s374_s0 + $0x1e] sm:$0x3] }
   0xf   :  { %v204_v45 = vld [vmem:[%s375_s1 + $0xf] ss:$0 sm:$0xff]  ;;  %168 = vst.msk [vmem:[#allocation2 + $0x16] sm:$0x3] %vm156_vm0, %v151_v37  ;;  %169 = vst.msk [vmem:[#allocation2 + $0x18] sm:$0x3] %vm156_vm0, %v152_v38  ;;  %v154_v46 = vadd.f32 %v203_v43, %v26_v41 }
  0x10   :  { %v155_v47 = vadd.f32 %v204_v45, %v27_v44 }
  0x11   :  { %7 = vsyncpa [#allocation3], 0  ;;  %s232_s17 = smov [#allocation2]   ;;  %170 = vst.msk [vmem:[#allocation2 + $0x1a] sm:$0x3] %vm156_vm0, %v153_v42 }
  0x12   :  { %s178_s18 = sshll.u32 %s232_s17, 4  ;;  %171 = vst.msk [vmem:[#allocation2 + $0x1c] sm:$0x3] %vm156_vm0, %v154_v46  ;;  %172 = vst.msk [vmem:[#allocation2 + $0x1e] sm:$0x3] %vm156_vm0, %v155_v47  ;;  %s179_s18 = int_to_ptr.vmem [resolvable:$true] %s178_s18 }
  0x13   :  { %s208_s0 = scalar_lea.vmem %s179_s18, 512  ;;  %p213_p1 = scmp.lt.s32.totalorder %s179_s18, %s179_s18 }
  0x14   :  { %p209_p0 = scmp.ne.s32.totalorder %s179_s18, %s208_s0  ;;  %p214_p2 = scmp.lt.s32.totalorder %s208_s0, %s208_s0 }
  0x16   :  { %p215_p3 = por %p214_p2, %p213_p1 }
  0x18   :  { %p216_p4 = pnand %p215_p3, %p209_p0 }
  0x1a   :  { %219 = shalt.err (!%p216_p4)
}
  0x1b   :  { %s220_s20 = scalar_lea.hbm %s376_s2, 512 }
  0x1c   :  { %p221_p5 = scmp.ne.s32.totalorder %s376_s2, %s220_s20  ;;  %p224_p6 = scmp.lt.u32.totalorder %s220_s20, %s376_s2 }
  0x1e   :  { %p226_p7 = pnand %p224_p6, %p221_p5 }
  0x20   :  { %229 = shalt.err (!%p226_p7)
}
  0x21   :  { %s233_s25 = smov 32   ;;  %s234_s26 = smov 2  }
  0x22   :  { %184 = dma.vmem_to_hbm [thread:$0]  %s179_s18, 512, %s376_s2, [#allocation3], %s233_s25, %s233_s25, %s234_s26  }
  0x23   :  { %230 = dma.done.wait [#allocation3], 512  }
  0x24   :  { %231 = vsyncadd [#allocation3], 4294966784 }
  0x25   :  { %188 = vsyncpa [#allocation3], 1 }

</bundles_post_ra>
